<compile_context>
chip_gen: v6e
topology: v6e:2x2x1
jax: 0.10.0
libtpu: 0.0.40
codegen_flags: <defaults>
</compile_context>

<pallas_src>
import functools

import numpy as np
import jax
import jax.numpy as jnp
from jax import lax
from jax.experimental import pallas as pl
from jax.experimental.pallas import tpu as pltpu


_INV_SQRT2 = 0.7071067811865476


def _erf(x):
    """Abramowitz-Stegun 7.1.26 erf approximation (abs err <= 1.5e-7)."""
    ax = jnp.abs(x)
    t = 1.0 / (1.0 + 0.3275911 * ax)
    poly = t * (0.254829592
                + t * (-0.284496736
                       + t * (1.421413741
                              + t * (-1.453152027 + t * 1.061405429))))
    e = 1.0 - poly * jnp.exp(-ax * ax)
    return jnp.where(x < 0, -e, e)


def fcu_down_kernel(xp_ref, w_ref, p_ref, out_ref, *, eps):
    """One row block: fused conv1x1+avgpool matmul -> LayerNorm -> GELU."""
    # bf16 x bf16 -> f32 MXU matmul; the 1/s^2 pooling factor is already
    # folded into w_ref, so this single dot IS conv_project + sample_pooling.
    h = jnp.dot(xp_ref[...], w_ref[...],
                preferred_element_type=jnp.float32)            # (TM, Cout) f32

    p = p_ref[...]                       # (8, Cout): rows 0=bias,1=gamma,2=beta
    h = h + p[0:1, :]                    # conv bias (commutes with avg-pool)

    # Single-pass LayerNorm statistics over channels (lane axis), eps = 1e-6.
    mu = jnp.mean(h, axis=-1, keepdims=True)
    var = jnp.mean(h * h, axis=-1, keepdims=True) - mu * mu
    y = (h - mu) * lax.rsqrt(var + eps) * p[1:2, :] + p[2:3, :]

    # Exact (erf-based) GELU, matching nn.GELU()'s default.
    out_ref[...] = (0.5 * y * (1.0 + _erf(y * _INV_SQRT2))).astype(out_ref.dtype)


def _split_rows(M, sublane=8, max_rows=1024):
    """Pick (num_blocks, rows_per_block) for the flattened B*Np rows.

    Each block is a multiple of the f32 sublane tile (8) so stores stay
    unmasked; we prefer >=2 blocks (keeps both v7x TensorCores busy) and cap
    rows/block so the double-buffered bf16 xp block stays far below the
    scoped VMEM default on every generation (v7x has half of v5e/v6e's VMEM).
    """
    for nb in range(max(2, pl.cdiv(M, max_rows)), M // sublane + 1):
        if M % nb == 0 and (M // nb) % sublane == 0:
            return nb, M // nb
    return 1, M


@functools.partial(jax.jit, static_argnums=(5, 6))
def fcu_down(x_nchw, w, b, gamma, beta, dw_stride, eps=1e-6):
    """FCUDown.forward: (B, Cin, H, W) -> (B, (H//s)*(W//s), Cout).

    `w` is the 1x1 conv weight laid out as (Cin, Cout); PyTorch's Conv2d
    stores (Cout, Cin, 1, 1), so callers transpose/squeeze before calling.
    """
    B, Cin, H, W = x_nchw.shape
    Cout = w.shape[1]
    s = dw_stride
    assert H % s == 0 and W % s == 0, "TODO(synk): AvgPool2d floor mode"
    Hp, Wp = H // s, W // s
    Np = Hp * Wp
    K = s * s * Cin
    M = B * Np
    assert M % 8 == 0, "B*(H/s)*(W/s) must be a multiple of the f32 sublane"

    # Layout plumbing (im2col): each s x s pooling window becomes one
    # lane-dense row so conv + pool collapse into a single MXU matmul.  Under
    # jit this is one fused relayout pass, emitted in bf16 (half the HBM
    # bytes of the f32 input).
    xp = jnp.transpose(x_nchw, (0, 2, 3, 1))                  # (B, H, W, Cin)
    xp = xp.reshape(B, Hp, s, Wp, s, Cin)
    xp = jnp.transpose(xp, (0, 1, 3, 2, 4, 5)).reshape(M, K)
    xp = xp.astype(jnp.bfloat16)

    # Fold the 1/s^2 average-pooling factor into the tiled conv weight and
    # cast to bf16 (MXU-native; 1/s^2 is a power of two here so the cast is
    # exact whenever w is bf16-exact).
    w_fused = (jnp.tile(w, (s * s, 1)) * (1.0 / (s * s))).astype(jnp.bfloat16)

    # Pack bias / LN gamma / LN beta into one sublane-padded (8, Cout) f32
    # block: one DMA + one double-buffer instead of three tiny (1, Cout) ones.
    params = jnp.zeros((8, Cout), jnp.float32)
    params = params.at[0].set(b.astype(jnp.float32))
    params = params.at[1].set(gamma.astype(jnp.float32))
    params = params.at[2].set(beta.astype(jnp.float32))

    nb, tm = _split_rows(M)
    kernel = functools.partial(fcu_down_kernel, eps=eps)

    out = pl.pallas_call(
        kernel,
        out_shape=jax.ShapeDtypeStruct((M, Cout), x_nchw.dtype),
        grid_spec=pltpu.PrefetchScalarGridSpec(
            num_scalar_prefetch=0,
            grid=(nb,),
            in_specs=[pl.BlockSpec((tm, K), lambda i: (i, 0)),
                      pl.BlockSpec((K, Cout), lambda i: (0, 0)),
                      pl.BlockSpec((8, Cout), lambda i: (0, 0))],
            out_specs=pl.BlockSpec((tm, Cout), lambda i: (i, 0))),
        compiler_params=pltpu.CompilerParams(
            dimension_semantics=("parallel",)),
    )(xp, w_fused, params)

    return out.reshape(B, Np, Cout)


def ref_forward(x_nchw, w, b, gamma, beta, dw_stride, eps=1e-6):
    """Pure-JAX f32 reference with PyTorch FCUDown semantics."""
    B, Cin, H, W = x_nchw.shape
    s = dw_stride
    h = jnp.einsum('bchw,co->bohw', x_nchw, w) + b.reshape(1, -1, 1, 1)
    hp = h.reshape(B, -1, H // s, s, W // s, s).mean(axis=(3, 5))
    t = hp.reshape(B, hp.shape[1], -1).transpose(0, 2, 1)     # (B, Np, Cout)
    mu = t.mean(-1, keepdims=True)
    var = ((t - mu) ** 2).mean(-1, keepdims=True)
    y = (t - mu) / jnp.sqrt(var + eps) * gamma + beta
    return jax.nn.gelu(y, approximate=False)                  # exact erf GELU


if __name__ == "__main__":
    key = jax.random.PRNGKey(0)
    B, Cin, H, W = 2, 16, 16, 16
    Cout, dw_stride = 128, 4          # outplanes = transformer embed width

    k1, k2, k3, k4, k5 = jax.random.split(key, 5)

    # Round test data to bf16-representable values so the correctness check is
    # insensitive to the kernel's bf16 MXU operand cast.
    def bf16_exact(a):
        return a.astype(jnp.bfloat16).astype(jnp.float32)

    x = bf16_exact(jax.random.normal(k1, (B, Cin, H, W), jnp.float32))
    w = bf16_exact(jax.random.normal(k2, (Cin, Cout), jnp.float32) /
                   np.sqrt(Cin))
    b = bf16_exact(0.1 * jax.random.normal(k3, (Cout,), jnp.float32))
    gamma = bf16_exact(1.0 + 0.1 * jax.random.normal(k4, (Cout,), jnp.float32))
    beta = bf16_exact(0.1 * jax.random.normal(k5, (Cout,), jnp.float32))

    out = jax.block_until_ready(fcu_down(x, w, b, gamma, beta, dw_stride))
    ref = ref_forward(x, w, b, gamma, beta, dw_stride)

    assert out.shape == (B, (H // dw_stride) * (W // dw_stride), Cout)
    assert np.allclose(np.asarray(out), np.asarray(ref), rtol=1e-4, atol=1e-4)
    print("KERNEL_OK")
</pallas_src>

<mosaic_0001>
module attributes {stable_mosaic.version = 11 : i64} {
  func.func @fcu_down_kernel(%arg0: i32, %arg1: memref<16x256xbf16, #tpu.memory_space<vmem>>, %arg2: memref<256x128xbf16, #tpu.memory_space<vmem>>, %arg3: memref<8x128xf32, #tpu.memory_space<vmem>>, %arg4: memref<16x128xf32, #tpu.memory_space<vmem>>) attributes {dimension_semantics = [#tpu.dimension_semantics<parallel>], iteration_bounds = array<i64: 2>, scalar_prefetch = 0 : i64, scratch_operands = 0 : i64, tpu.core_type = #tpu.core_type<tc>, window_params = [{transform_indices = @transform_0, window_bounds = array<i64: 16, 256>}, {pipeline_mode = #tpu.pipeline_mode<synchronous>, transform_indices = @transform_1, window_bounds = array<i64: 256, 128>}, {pipeline_mode = #tpu.pipeline_mode<synchronous>, transform_indices = @transform_2, window_bounds = array<i64: 8, 128>}, {transform_indices = @transform_3, window_bounds = array<i64: 16, 128>}]} {
    %c0 = arith.constant 0 : index
    %c0_0 = arith.constant 0 : index
    %0 = vector.load %arg1[%c0, %c0_0] : memref<16x256xbf16, #tpu.memory_space<vmem>>, vector<16x256xbf16>
    %c0_1 = arith.constant 0 : index
    %c0_2 = arith.constant 0 : index
    %1 = vector.load %arg2[%c0_1, %c0_2] : memref<256x128xbf16, #tpu.memory_space<vmem>>, vector<256x128xbf16>
    %cst = arith.constant dense<0.000000e+00> : vector<16x128xf32>
    %2 = tpu.matmul %0, %1, %cst {dimension_numbers = #tpu.dot_dimension_numbers<[1], [0], [0], [1], [0, 0, 1, 1], [], []>} : vector<16x256xbf16>, vector<256x128xbf16>, vector<16x128xf32> -> vector<16x128xf32>
    %c0_3 = arith.constant 0 : index
    %c0_4 = arith.constant 0 : index
    %3 = vector.load %arg3[%c0_3, %c0_4] : memref<8x128xf32, #tpu.memory_space<vmem>>, vector<8x128xf32>
    %4 = vector.extract_strided_slice %3 {offsets = [0, 0], sizes = [1, 128], strides = [1, 1]} : vector<8x128xf32> to vector<1x128xf32>
    %5 = vector.broadcast %4 : vector<1x128xf32> to vector<16x128xf32>
    %6 = arith.addf %2, %5 : vector<16x128xf32>
    %cst_5 = arith.constant dense<0.000000e+00> : vector<16xf32>
    %7 = vector.multi_reduction <add>, %6, %cst_5 [1] : vector<16x128xf32> to vector<16xf32>
    %8 = vector.shape_cast %7 : vector<16xf32> to vector<16x1xf32>
    %cst_6 = arith.constant 1.280000e+02 : f32
    %9 = vector.broadcast %cst_6 : f32 to vector<16x1xf32>
    %10 = arith.divf %8, %9 : vector<16x1xf32>
    %11 = arith.mulf %6, %6 : vector<16x128xf32>
    %cst_7 = arith.constant dense<0.000000e+00> : vector<16xf32>
    %12 = vector.multi_reduction <add>, %11, %cst_7 [1] : vector<16x128xf32> to vector<16xf32>
    %13 = vector.shape_cast %12 : vector<16xf32> to vector<16x1xf32>
    %cst_8 = arith.constant 1.280000e+02 : f32
    %14 = vector.broadcast %cst_8 : f32 to vector<16x1xf32>
    %15 = arith.divf %13, %14 : vector<16x1xf32>
    %16 = arith.mulf %10, %10 : vector<16x1xf32>
    %17 = arith.subf %15, %16 : vector<16x1xf32>
    %18 = vector.broadcast %10 : vector<16x1xf32> to vector<16x128xf32>
    %19 = arith.subf %6, %18 : vector<16x128xf32>
    %cst_9 = arith.constant 9.99999997E-7 : f32
    %20 = vector.broadcast %cst_9 : f32 to vector<16x1xf32>
    %21 = arith.addf %17, %20 : vector<16x1xf32>
    %22 = math.rsqrt %21 : vector<16x1xf32>
    %23 = vector.broadcast %22 : vector<16x1xf32> to vector<16x128xf32>
    %24 = arith.mulf %19, %23 : vector<16x128xf32>
    %25 = vector.extract_strided_slice %3 {offsets = [1, 0], sizes = [1, 128], strides = [1, 1]} : vector<8x128xf32> to vector<1x128xf32>
    %26 = vector.broadcast %25 : vector<1x128xf32> to vector<16x128xf32>
    %27 = arith.mulf %24, %26 : vector<16x128xf32>
    %28 = vector.extract_strided_slice %3 {offsets = [2, 0], sizes = [1, 128], strides = [1, 1]} : vector<8x128xf32> to vector<1x128xf32>
    %29 = vector.broadcast %28 : vector<1x128xf32> to vector<16x128xf32>
    %30 = arith.addf %27, %29 : vector<16x128xf32>
    %cst_10 = arith.constant 5.000000e-01 : f32
    %31 = vector.broadcast %cst_10 : f32 to vector<16x128xf32>
    %32 = arith.mulf %31, %30 : vector<16x128xf32>
    %cst_11 = arith.constant 0.707106769 : f32
    %33 = vector.broadcast %cst_11 : f32 to vector<16x128xf32>
    %34 = arith.mulf %30, %33 : vector<16x128xf32>
    %35 = math.absf %34 : vector<16x128xf32>
    %cst_12 = arith.constant 0.327591091 : f32
    %36 = vector.broadcast %cst_12 : f32 to vector<16x128xf32>
    %37 = arith.mulf %36, %35 : vector<16x128xf32>
    %cst_13 = arith.constant 1.000000e+00 : f32
    %38 = vector.broadcast %cst_13 : f32 to vector<16x128xf32>
    %39 = arith.addf %38, %37 : vector<16x128xf32>
    %cst_14 = arith.constant 1.000000e+00 : f32
    %40 = vector.broadcast %cst_14 : f32 to vector<16x128xf32>
    %41 = arith.divf %40, %39 : vector<16x128xf32>
    %cst_15 = arith.constant 1.06140542 : f32
    %42 = vector.broadcast %cst_15 : f32 to vector<16x128xf32>
    %43 = arith.mulf %41, %42 : vector<16x128xf32>
    %cst_16 = arith.constant -1.45315206 : f32
    %44 = vector.broadcast %cst_16 : f32 to vector<16x128xf32>
    %45 = arith.addf %44, %43 : vector<16x128xf32>
    %46 = arith.mulf %41, %45 : vector<16x128xf32>
    %cst_17 = arith.constant 1.42141378 : f32
    %47 = vector.broadcast %cst_17 : f32 to vector<16x128xf32>
    %48 = arith.addf %47, %46 : vector<16x128xf32>
    %49 = arith.mulf %41, %48 : vector<16x128xf32>
    %cst_18 = arith.constant -0.284496725 : f32
    %50 = vector.broadcast %cst_18 : f32 to vector<16x128xf32>
    %51 = arith.addf %50, %49 : vector<16x128xf32>
    %52 = arith.mulf %41, %51 : vector<16x128xf32>
    %cst_19 = arith.constant 0.254829586 : f32
    %53 = vector.broadcast %cst_19 : f32 to vector<16x128xf32>
    %54 = arith.addf %53, %52 : vector<16x128xf32>
    %55 = arith.mulf %41, %54 : vector<16x128xf32>
    %cst_20 = arith.constant 0.000000e+00 : f32
    %56 = vector.broadcast %cst_20 : f32 to vector<16x128xf32>
    %57 = arith.subf %56, %35 : vector<16x128xf32>
    %58 = arith.mulf %57, %35 : vector<16x128xf32>
    %59 = math.exp %58 : vector<16x128xf32>
    %60 = arith.mulf %55, %59 : vector<16x128xf32>
    %cst_21 = arith.constant 1.000000e+00 : f32
    %61 = vector.broadcast %cst_21 : f32 to vector<16x128xf32>
    %62 = arith.subf %61, %60 : vector<16x128xf32>
    %cst_22 = arith.constant 0.000000e+00 : f32
    %63 = vector.broadcast %cst_22 : f32 to vector<16x128xf32>
    %64 = arith.cmpf olt, %34, %63 : vector<16x128xf32>
    %cst_23 = arith.constant 0.000000e+00 : f32
    %65 = vector.broadcast %cst_23 : f32 to vector<16x128xf32>
    %66 = arith.subf %65, %62 : vector<16x128xf32>
    %67 = arith.select %64, %66, %62 : vector<16x128xi1>, vector<16x128xf32>
    %cst_24 = arith.constant 1.000000e+00 : f32
    %68 = vector.broadcast %cst_24 : f32 to vector<16x128xf32>
    %69 = arith.addf %68, %67 : vector<16x128xf32>
    %70 = arith.mulf %32, %69 : vector<16x128xf32>
    %c0_25 = arith.constant 0 : index
    %c0_26 = arith.constant 0 : index
    %71 = vector.load %arg4[%c0_25, %c0_26] : memref<16x128xf32, #tpu.memory_space<vmem>>, vector<16x128xf32>
    tpu.vector_store %arg4[%c0_25, %c0_26], %70 {strides = array<i32>} : memref<16x128xf32, #tpu.memory_space<vmem>>, vector<16x128xf32>,
    return
  }
  func.func @transform_0(%arg0: i32) -> (i32, i32) {
    %c0_i32 = arith.constant 0 : i32
    %c0_i32_0 = arith.constant 0 : i32
    return %arg0, %c0_i32 : i32, i32
  }
  func.func @transform_1(%arg0: i32) -> (i32, i32) {
    %c0_i32 = arith.constant 0 : i32
    %c0_i32_0 = arith.constant 0 : i32
    %c0_i32_1 = arith.constant 0 : i32
    return %c0_i32, %c0_i32_0 : i32, i32
  }
  func.func @transform_2(%arg0: i32) -> (i32, i32) {
    %c0_i32 = arith.constant 0 : i32
    %c0_i32_0 = arith.constant 0 : i32
    %c0_i32_1 = arith.constant 0 : i32
    return %c0_i32, %c0_i32_0 : i32, i32
  }
  func.func @transform_3(%arg0: i32) -> (i32, i32) {
    %c0_i32 = arith.constant 0 : i32
    %c0_i32_0 = arith.constant 0 : i32
    return %arg0, %c0_i32 : i32, i32
  }
}

</mosaic_0001>

<bundles_post_ra>
// kernel: fcu_down.1
= control target key start
LH: loop header
LB: loop body
LE: loop exit
PB: predicated region body
PF: predicated region fallthrough
CT: control target
= control target key end

     0   :  { %8 = vsyncpa [#allocation3], 0  ;;  %s897_s0 = inlined_call_operand.vmem [shape: bf16[32,256], index: 0, kind: input, shape index: {}]   ;;  %s898_s1 = inlined_call_operand.vmem [shape: bf16[256,128], index: 1, kind: input, shape index: {}]   ;;  %s899_s2 = inlined_call_operand.vmem [shape: f32[8,128], index: 2, kind: input, shape index: {}]   ;;  %s900_s3 = inlined_call_operand.hbm [shape: f32[32,128], index: 3, kind: output, shape index: {}]  }
   0x1   :  { %10 = vsyncpa [#allocation3 + $0x1], 0  ;;  %s745_s12 = smov 0   ;;  %s747_s13 = smov 0  }
   0x2   :  { %s749_s14 = smov 0   ;;  %s751_s15 = smov 0  }
   0x3 LB: > { %s766_s16 = sadd.s32 4294967295, %s720_s15   ;;  %s533_s17 = sadd.s32 4294967294, %s720_s15   ;;  %s720_s15 = sphi %s751_s15, %s906_s15   ;;  %s716_s14 = sphi %s749_s14, %s905_s14   ;;  %s712_s13 = sphi %s747_s13, %s904_s13   ;;  %s708_s12 = sphi %s745_s12, %s903_s12  }
   0x4   : > { %s770_s18 = sadd.s32 1, %s720_s15   ;;  %s91_s19 = sadd.s32 1, %s716_s14 }
   0x5   : > { %s88_s20 = ssub.s32 %s720_s15, %s770_s18  ;;  %p101_p0 = scmp.ne.s32.totalorder %s716_s14, %s712_s13 }
   0x6   : > { %p89_p1 = scmp.eq.s32.totalorder %s88_s20, 0  ;;  %p102_p2 = scmp.eq.s32.totalorder %s766_s16, 1 }
   0x7   : > { %p107_p3 = scmp.ne.s32.totalorder %s712_s13, %s708_s12  ;;  %p108_p4 = scmp.eq.s32.totalorder %s533_s17, 1 }
   0x8   : > { %s781_s21 = scalar_select %p89_p1, %s716_s14, %s91_s19  }
   0x9   : > { %p783_p5 = por %p102_p2, %p101_p0  ;;  %p787_p6 = por %p108_p4, %p107_p3 }
   0xa   : > { %p536_p7 = scmp.ge.s32.totalorder %s720_s15, 1  ;;  %p142_p8 = scmp.lt.s32.totalorder %s720_s15, 3 }
   0xc   : > { %p143_p9 = pnand %p536_p7, %p142_p8 }
   0xd   : > { %s538_s26 = sshll.u32 (!%p143_p9), %s766_s16, 1  ;;  %s164_s28 = sand.u32 (!%p143_p9), 1, %s712_s13  }
   0xe   : > { %146 = sbr.rel (%p143_p9) target bundleno = 486 (0x1e6), region = 32  ;;  %p168_p10 = scmp.lt.s32.totalorder (!%p143_p9), %s538_s26, 3 }
   0xf   : > { %s565_s30 = sshll.u32 (!%p143_p9), %s766_s16, 8  ;;  %s857_s8 = scalar_lea.sflag (!%p143_p9), [#allocation3], %s164_s28 }
  0x10   : > { %s853_s7 = scalar_lea.hbm (!%p143_p9), %s900_s3, %s565_s30  ;;  %s722_s9 = smov (!%p143_p9), [#allocation2]  }
  0x11   : > { %s664_s10 = sshll.u32 (!%p143_p9), %s722_s9, 4  ;;  %s665_s10 = int_to_ptr.vmem [resolvable:$false] %s664_s10 }
  0x12   : > { %s666_s11 = scalar_lea.vmem (!%p143_p9), %s665_s10, 512 }
  0x13   : > { %v629_v0 = vld [vmem:[%s898_s1 + $0x78] sm:$0xff]   ;;  %v631_v2 = vld [vmem:[%s898_s1 + $0x70] sm:$0xff]   ;;  %v633_v4 = vld [vmem:[%s898_s1 + $0x68] sm:$0xff]   ;;  %s908_s26 = smov (!%p168_p10, %s538_s26), 3  ;;  %v211_v18 = vlaneseq }
  0x14   : > { %v630_v1 = vld [vmem:[%s898_s1 + $0x38] sm:$0xff]   ;;  %566 = vmatprep.subr.bf16.mxu0 %v629_v0  ;;  %v632_v3 = vld [vmem:[%s898_s1 + $0x30] sm:$0xff]   ;;  %v634_v5 = vld [vmem:[%s898_s1 + $0x28] sm:$0xff]   ;;  %s564_s20 = sshll.u32 %s908_s26, 3 }
  0x15   : > { %567 = vmatpush3.bf16.msra.mxu0 %v630_v1  ;;  %v635_v6 = vld [vmem:[%s898_s1 + $0x60] sm:$0xff]   ;;  %v637_v8 = vld [vmem:[%s898_s1 + $0x58] sm:$0xff]   ;;  %s172_s29 = scalar_lea.vmem %s897_s0, %s564_s20  ;;  %v639_v10 = vld [vmem:[%s898_s1 + $0x50] sm:$0xff]   ;;  %v212_v19 = vshrl.u32 %v211_v18, 7 }
  0x16   : > { %568 = vmatprep.subr.bf16.mxu0 %v631_v2  ;;  %v636_v7 = vld [vmem:[%s898_s1 + $0x20] sm:$0xff]   ;;  %v638_v9 = vld [vmem:[%s898_s1 + $0x18] sm:$0xff]   ;;  %v640_v12 = vld [vmem:[%s898_s1 + $0x10] sm:$0xff]  }
  0x17   : > { %v647_v11 = vld [vmem:[%s172_s29 + $0x4] ss:$8 sps:$4 sm:$0xff]   ;;  %v645_v17 = vld [vmem:[%s172_s29] ss:$8 sps:$4 sm:$0xff]   ;;  %v391_v20 = vsub.s32 1, %v212_v19  ;;  %v397_v21 = vsub.s32 2, %v212_v19 }
  0x18   : > { %353 = vmatprep.mubr.bf16.mxu0 %v647_v11  ;;  %v641_v13 = vld [vmem:[%s898_s1 + $0x48] sm:$0xff]   ;;  %v643_v15 = vld [vmem:[%s898_s1 + $0x40] sm:$0xff]   ;;  %v213_v25 = vsub.s32 0, %v212_v19  ;;  %s537_s29 = sshll.u32 %s164_s28, 4 }
  0x19   : > { %569 = vmatpush3.bf16.msra.mxu0 %v632_v3  ;;  %v642_v14 = vld [vmem:[%s898_s1 + $0x8] sm:$0xff]   ;;  %v644_v16 = vld [vmem:[%s898_s1] sm:$0xff]   ;;  %s166_s4 = scalar_lea.vmem [#allocation2], %s537_s29 }
  0x1a   : > { %570 = vmatprep.subr.bf16.mxu0 %v633_v4  ;;  %v210_v22 = vld [vmem:[%s899_s2] sm:$0xff]  ;;  %s471_s5 = sshll.u32 %s166_s4, 4  ;;  %s855_s5 = int_to_ptr.vmem [resolvable:$true] %s471_s5 }
  0x1b   : > { %v392_v23 = vrot.slane %v210_v22, %v391_v20  ;;  %v398_v24 = vrot.slane %v210_v22, %v397_v21  ;;  %v214_v27 = vrot.slane %v210_v22, %v213_v25  ;;  %s660_s16 = scalar_lea.vmem %s855_s5, 256  ;;  %p667_p0 = scmp.lt.s32.totalorder %s855_s5, %s665_s10 }
  0x1c   : > { %p661_p11 = scmp.ne.s32.totalorder %s855_s5, %s660_s16  ;;  %p668_p1 = scmp.lt.s32.totalorder %s666_s11, %s660_s16 }
  0x1d   : > { %571 = vmatpush3.bf16.msra.mxu0 %v634_v5 }
  0x1e   : > { %572 = vmatprep.subr.bf16.mxu0 %v635_v6  ;;  %p662_p12 = pnand %p661_p11, %p783_p5  ;;  %p669_p2 = por %p668_p1, %p667_p0 }
  0x20   : > { %p663_p13 = pneg %p662_p12 }
  0x21   : > { %573 = vmatpush3.bf16.msra.mxu0 %v636_v7 }
  0x22   : > { %574 = vmatprep.subr.bf16.mxu0 %v637_v8  ;;  %p670_p3 = pnand %p669_p2, %p663_p13 }
  0x25   : > { %575 = vmatpush3.bf16.msra.mxu0 %v638_v9 }
  0x26   : > { %576 = vmatprep.subr.bf16.mxu0 %v639_v10 }
  0x29   : > { %577 = vmatpush3.bf16.msra.mxu0 %v640_v12 }
  0x2a   : > { %578 = vmatprep.subr.bf16.mxu0 %v641_v13 }
  0x2d   : > { %579 = vmatpush3.bf16.msra.mxu0 %v642_v14 }
  0x2e   : > { %580 = vmatprep.subr.bf16.mxu0 %v643_v15 }
  0x31   : > { %581 = vmatpush3.bf16.msra.mxu0 %v644_v16 }
  0x34   : > { %354 = vmatmul.mubr.bf16.vlgmr.msra.gmra.mxu0 %v645_v17 }
  0xf4   : > { %v582_v26 = vpop.f32.mrf.mxu0 }
  0xf6   : > { %v583_v28 = vpop.f32.mrf.mxu0 }
  0xf7   : > { %v584_v29 = vadd.f32 %v583_v28, %v582_v26 }
  0xf8   : > { %v585_v30 = vpop.f32.mrf.mxu0 }
  0xf9   : > { %v356_v31 = vadd.f32 %v584_v29, %v214_v27 }
  0xfa   : > { %v586_v32 = vpop.f32.mrf.mxu0 }
  0xfb   : > { %v587_v33 = vadd.f32 %v586_v32, %v585_v30  ;;  %362 = vadd.xlane.f32.xlu0 %v356_v31  ;;  %v369_v34 = vmul.f32 %v356_v31, %v356_v31 }
  0xfd   : > { %v359_v35 = vadd.f32 %v587_v33, %v214_v27  ;;  %371 = vadd.xlane.f32.xlu1 %v369_v34 }
  0xff   : > { %364 = vadd.xlane.f32.xlu0 %v359_v35  ;;  %v370_v36 = vmul.f32 %v359_v35, %v359_v35 }
 0x101   : > { %373 = vadd.xlane.f32.xlu1 %v370_v36 }
 0x184   : > { %v363_v37 = vpop.xlane.xlu0 %362 }
 0x185   : > { %v367_v38 = vmul.f32 0.0078125, %v363_v37 }
 0x186   : > { %v372_v39 = vpop.xlane.xlu1 %371 }
 0x187   : > { %v377_v40 = vmul.f32 %v367_v38, %v367_v38  ;;  %v375_v41 = vmul.f32 0.0078125, %v372_v39  ;;  %v381_v51 = vsub.f32 %v356_v31, %v367_v38 }
 0x188   : > { %v365_v42 = vpop.xlane.xlu0 %364 }
 0x189   : > { %v379_v43 = vsub.f32 %v375_v41, %v377_v40  ;;  %v368_v44 = vmul.f32 0.0078125, %v365_v42 }
 0x18a   : > { %v374_v45 = vpop.xlane.xlu1 %373 }
 0x18b   : > { %v383_v46 = vadd.f32 1e-06, %v379_v43  ;;  %v378_v47 = vmul.f32 %v368_v44, %v368_v44  ;;  %v376_v48 = vmul.f32 0.0078125, %v374_v45  ;;  %v382_v55 = vsub.f32 %v359_v35, %v368_v44 }
 0x18d   : > { %648 = vrsqrt.f32 %v383_v46  ;;  %v380_v49 = vsub.f32 %v376_v48, %v378_v47 }
 0x18f   : > { %v384_v50 = vadd.f32 1e-06, %v380_v49 }
 0x191   : > { %650 = vrsqrt.f32 %v384_v50 }
 0x19a   : > { %v649_v52 = vpop.eup %648 }
 0x19b   : > { %v387_v53 = vmul.f32 %v649_v52, %v381_v51 }
 0x19d   : > { %v393_v54 = vmul.f32 %v392_v23, %v387_v53 }
 0x19e   : > { %v651_v56 = vpop.eup %650 }
 0x19f   : > { %v388_v57 = vmul.f32 %v651_v56, %v382_v55  ;;  %v399_v58 = vadd.f32 %v398_v24, %v393_v54 }
 0x1a1   : > { %v394_v59 = vmul.f32 %v392_v23, %v388_v57  ;;  %v403_v60 = vmul.f32 0.70710677, %v399_v58  ;;  %v401_v39 = vmul.f32 0.5, %v399_v58 }
 0x1a3   : > { %v400_v61 = vadd.f32 %v398_v24, %v394_v59  ;;  %v405_v62 = vand.u32 2147483647, %v403_v60  ;;  %vm445_vm0 = vcmp.lt.f32.partialorder %v403_v60, 0.0 }
 0x1a5   : > { %v404_v63 = vmul.f32 0.70710677, %v400_v61  ;;  %v407_v0 = vmul.f32 0.3275911, %v405_v62  ;;  %v433_v5 = vsub.f32 0.0, %v405_v62  ;;  %v402_v44 = vmul.f32 0.5, %v400_v61 }
 0x1a7   : > { %v406_v1 = vand.u32 2147483647, %v404_v63  ;;  %v409_v2 = vadd.f32 1.0, %v407_v0  ;;  %v435_v7 = vmul.f32 %v433_v5, %v405_v62  ;;  %vm446_vm1 = vcmp.lt.f32.partialorder %v404_v63, 0.0 }
 0x1a9   : > { %v408_v3 = vmul.f32 0.3275911, %v406_v1  ;;  %652 = vrcp.f32 %v409_v2  ;;  %v434_v6 = vsub.f32 0.0, %v406_v1  ;;  %v437_v11 = vmul.f32 1.442695, %v435_v7 }
 0x1ab   : > { %v410_v4 = vadd.f32 1.0, %v408_v3  ;;  %v436_v10 = vmul.f32 %v434_v6, %v406_v1 }
 0x1ad   : > { %654 = vrcp.f32 %v410_v4  ;;  %v439_v16 = vmul.f32 1.442695, %v436_v10 }
 0x1ae   : > { %656 = vpow2.f32 %v437_v11 }
 0x1af   : > { %658 = vpow2.f32 %v439_v16 }
 0x1b6   : > { %v653_v8 = vpop.eup %652 }
 0x1b7   : > { %v415_v9 = vmul.f32 1.0614054, %v653_v8 }
 0x1b9   : > { %v417_v12 = vadd.f32 -1.4531521, %v415_v9 }
 0x1ba   : > { %v655_v13 = vpop.eup %654 }
 0x1bb   : > { %v416_v14 = vmul.f32 1.0614054, %v655_v13  ;;  %v419_v15 = vmul.f32 %v653_v8, %v417_v12  ;;  %v657_v29 = vpop.eup %656 }
 0x1bc   : > { %v659_v34 = vpop.eup %658 }
 0x1bd   : > { %v418_v17 = vadd.f32 -1.4531521, %v416_v14  ;;  %v421_v18 = vadd.f32 1.4214138, %v419_v15 }
 0x1bf   : > { %v420_v19 = vmul.f32 %v655_v13, %v418_v17  ;;  %v423_v20 = vmul.f32 %v653_v8, %v421_v18 }
 0x1c1   : > { %v422_v21 = vadd.f32 1.4214138, %v420_v19  ;;  %v425_v22 = vadd.f32 -0.28449672, %v423_v20 }
 0x1c3   : > { %v424_v23 = vmul.f32 %v655_v13, %v422_v21  ;;  %v427_v24 = vmul.f32 %v653_v8, %v425_v22 }
 0x1c5   : > { %v426_v25 = vadd.f32 -0.28449672, %v424_v23  ;;  %v429_v26 = vadd.f32 0.2548296, %v427_v24 }
 0x1c7   : > { %v428_v27 = vmul.f32 %v655_v13, %v426_v25  ;;  %v431_v28 = vmul.f32 %v653_v8, %v429_v26 }
 0x1c9   : > { %v430_v30 = vadd.f32 0.2548296, %v428_v27  ;;  %v441_v31 = vmul.f32 %v657_v29, %v431_v28 }
 0x1cb   : > { %v432_v32 = vmul.f32 %v655_v13, %v430_v30  ;;  %v443_v33 = vsub.f32 1.0, %v441_v31 }
 0x1cd   : > { %v442_v35 = vmul.f32 %v659_v34, %v432_v32  ;;  %v447_v36 = vsub.f32 0.0, %v443_v33 }
 0x1cf   : > { %v444_v37 = vsub.f32 1.0, %v442_v35  ;;  %v449_v38 = vsel %vm445_vm0, %v447_v36, %v443_v33 }
 0x1d0   : > { %v451_v40 = vadd.f32 1.0, %v449_v38 }
 0x1d1   : > { %v448_v41 = vsub.f32 0.0, %v444_v37 }
 0x1d2   : > { %v453_v42 = vmul.f32 %v451_v40, %v401_v39 }
 0x1d3   : > { %v450_v43 = vsel %vm446_vm1, %v448_v41, %v444_v37 }
 0x1d4   : > { %v452_v45 = vadd.f32 1.0, %v450_v43  ;;  %455 = vst [vmem:[%s166_s4] sm:$0xff] %v453_v42 }
 0x1d6   : > { %v454_v46 = vmul.f32 %v452_v45, %v402_v44 }
 0x1d8   : > { %456 = vst [vmem:[%s166_s4 + $0x8] sm:$0xff] %v454_v46 }
 0x1d9   : > { %673 = shalt.err (!%p670_p3)
}
 0x1da   : > { %s674_s17 = scalar_lea.hbm %s853_s7, 256  ;;  %s678_s24 = scalar_lea.hbm %s900_s3, 512 }
 0x1db   : > { %p675_p4 = scmp.ne.s32.totalorder %s853_s7, %s674_s17  ;;  %p679_p9 = scmp.lt.s32.totalorder %s853_s7, %s900_s3 }
 0x1dc   : > { %p680_p10 = scmp.lt.s32.totalorder %s678_s24, %s674_s17 }
 0x1dd   : > { %p676_p7 = pnand %p675_p4, %p783_p5 }
 0x1de   : > { %p681_p11 = por %p680_p10, %p679_p9 }
 0x1df   : > { %p677_p8 = pneg %p676_p7 }
 0x1e1   : > { %p682_p12 = pnand %p681_p11, %p677_p8 }
 0x1e3   : > { %685 = shalt.err (!%p682_p12)
}
 0x1e4   : > { %s723_s28 = smov 128   ;;  %s724_s29 = smov 8  }
 0x1e5   : > { %588 = dma.vmem_to_hbm [thread:$0]  (%p783_p5), %s855_s5, 256, %s853_s7, %s857_s8, %s723_s28, %s723_s28, %s724_s29  }
 0x1e6 PF: > { %p594_p13 = scmp.ge.s32.totalorder %s720_s15, 2  ;;  %s486_s30 = sand.u32 1, %s708_s12  }
 0x1e7   : > { %s487_s4 = scalar_lea.sflag [#allocation3], %s486_s30 }
 0x1e8   : > { %p591_p0 = pnand %p594_p13, %p787_p6 }
 0x1ea   : > { %p592_p1 = pneg %p591_p0 }
 0x1ec   : > { %703 = dma.done.wait (%p592_p1), %s487_s4, 256  }
 0x1ed   : > { %705 = vsyncadd (%p592_p1), %s487_s4, 4294967040  ;;  %p13_p2 = scmp.ge.s32.totalorder %s770_s18, 4   ;;  %s903_s12 = smov %s712_s13 }
 0x1ee   : > { %s904_s13 = smov %s716_s14  ;;  %s905_s14 = smov %s781_s21 }
 0x1ef   : > { %s906_s15 = smov %s770_s18  ;;  %15 = sbr.rel (!%p13_p2) target bundleno = 3 (0x3), region = 67 }
 0x1f4   :  { %492 = vsyncpa [#allocation3], 1 }
 0x1f5   :  { %494 = vsyncpa [#allocation3 + $0x1], 1 }

</bundles_post_ra>
